<compile_context>
chip_gen: v7x
topology: tpu7x:2x2x1
jax: 0.10.0
libtpu: 0.0.40
codegen_flags: <defaults>
</compile_context>

<pallas_src>
import functools

import jax
import jax.numpy as jnp
from jax.experimental import pallas as pl
from jax.experimental.pallas import tpu as pltpu


def _round_up(x, m):
    return ((x + m - 1) // m) * m


# ----------------------------------------------------------------------------
# Pallas kernels: tiled patch projection (matmul + bias [+ fused LayerNorm])
# ----------------------------------------------------------------------------
def _proj_bias_kernel(x_ref, w_ref, b_ref, o_ref):
    # x: (TM, K) bf16   w: (K, N) bf16   b: (1, N) f32
    y = jnp.dot(x_ref[...], w_ref[...], preferred_element_type=jnp.float32)
    y = y + b_ref[...]
    o_ref[...] = y.astype(o_ref.dtype)


def _proj_ln_kernel(x_ref, w_ref, b_ref, g_ref, beta_ref, o_ref, *, eps: float):
    y = jnp.dot(x_ref[...], w_ref[...], preferred_element_type=jnp.float32)
    y = y + b_ref[...]
    # One-pass LayerNorm statistics in f32 (fine for patch-embed activations;
    # switch to two-pass if reused where |mean| >> std).
    n = y.shape[-1]
    inv_n = 1.0 / float(n)
    s1 = jnp.sum(y, axis=-1, keepdims=True)
    s2 = jnp.sum(y * y, axis=-1, keepdims=True)
    mu = s1 * inv_n
    var = jnp.maximum(s2 * inv_n - mu * mu, 0.0)
    y = (y - mu) * jax.lax.rsqrt(var + eps)
    y = y * g_ref[...] + beta_ref[...]
    o_ref[...] = y.astype(o_ref.dtype)


# ----------------------------------------------------------------------------
# Tiling choice: no M padding (and hence no output slice) whenever possible.
# ----------------------------------------------------------------------------
_TM_MAX = 2048
_TM_MIN = 512


def _choose_tiling(M):
    """Return (TM, M_pad).  Prefers TM that divides M exactly."""
    if M <= _TM_MAX:
        # Split into 2 equal 8-aligned tiles when there is enough work so the
        # two v7x TensorCores both get a tile; else one full-M tile (legal:
        # block dim == full array dim).
        if M >= 2 * _TM_MIN and M % 16 == 0:
            return M // 2, M
        return M, M
    # Largest divisor of M that is a multiple of 8 in [512, 2048].
    for t in range(_TM_MAX, _TM_MIN - 1, -8):
        if M % t == 0:
            return t, M
    # Rare fallback: minimal padding + post-slice (only prefix-of-rows slice).
    t = 1024
    return t, _round_up(M, t)


# ----------------------------------------------------------------------------
# Fused patch projection entry point
# ----------------------------------------------------------------------------
def patch_project(patches, w_bf16, b, gamma=None, beta=None, *,
                  eps: float = 1e-5, out_dtype=jnp.bfloat16):
    """patches(M,K) bf16 @ w(K,N) bf16 + b [+ LayerNorm], f32 accumulate."""
    M, K = patches.shape
    K2, N = w_bf16.shape
    assert K == K2
    apply_ln = gamma is not None

    TM, M_pad = _choose_tiling(M)
    x = patches
    if M_pad != M:
        # Padded rows go through LN with var~0 -> large finite values; they are
        # sliced away below, never reused.
        x = jnp.pad(x, ((0, M_pad - M), (0, 0)))

    b_p = b.reshape(1, N).astype(jnp.float32)
    vec_spec = pl.BlockSpec((1, N), lambda i: (0, 0))
    in_specs = [
        pl.BlockSpec((TM, K), lambda i: (i, 0)),   # streamed / double-buffered
        pl.BlockSpec((K, N), lambda i: (0, 0)),    # resident bf16 weights
        vec_spec,                                  # bias
    ]
    args = [x, w_bf16, b_p]

    if apply_ln:
        in_specs += [vec_spec, vec_spec]
        args += [gamma.reshape(1, N).astype(jnp.float32),
                 beta.reshape(1, N).astype(jnp.float32)]
        kernel = functools.partial(_proj_ln_kernel, eps=eps)
    else:
        kernel = _proj_bias_kernel

    out = pl.pallas_call(
        kernel,
        out_shape=jax.ShapeDtypeStruct((M_pad, N), out_dtype),
        grid_spec=pltpu.PrefetchScalarGridSpec(
            num_scalar_prefetch=0,
            grid=(M_pad // TM,),
            in_specs=in_specs,
            out_specs=pl.BlockSpec((TM, N), lambda i: (i, 0)),
        ),
        compiler_params=pltpu.CompilerParams(
            dimension_semantics=("parallel",)),
    )(*args)

    return out if M_pad == M else out[:M]


# ----------------------------------------------------------------------------
# Plain-JAX glue: im2col for conv with kernel_size == stride == patch_size
# (caller casts x to bf16 first so the transpose copy moves half the bytes).
# ----------------------------------------------------------------------------
def _im2col_2d(x, patch):
    # x: (B, C, H, W) NCHW
    B, C, H, W = x.shape
    p0, p1 = patch
    gh, gw = H // p0, W // p1
    x = x.reshape(B, C, gh, p0, gw, p1)
    x = x.transpose(0, 2, 4, 1, 3, 5)              # (B, gh, gw, C, p0, p1)
    return x.reshape(B * gh * gw, C * p0 * p1), (B, gh * gw)


def _im2col_3d(x, patch):
    # x: (B, C, H, W, D) — matches PatchEmbed3D's (B, C, H, W, D)
    B, C, H, W, D = x.shape
    p0, p1, p2 = patch
    gh, gw, gd = H // p0, W // p1, D // p2
    x = x.reshape(B, C, gh, p0, gw, p1, gd, p2)
    x = x.transpose(0, 2, 4, 6, 1, 3, 5, 7)        # (B, gh, gw, gd, C, p0, p1, p2)
    return x.reshape(B * gh * gw * gd, C * p0 * p1 * p2), (B, gh * gw * gd)


# ----------------------------------------------------------------------------
# Pure-JAX reference / tiny-input fallback
# ----------------------------------------------------------------------------
def _ref_project(patches, w, b, gamma=None, beta=None, eps=1e-5):
    y = patches @ w + b[None, :]
    if gamma is not None:
        mu = jnp.mean(y, axis=-1, keepdims=True)
        var = jnp.mean((y - mu) ** 2, axis=-1, keepdims=True)
        y = (y - mu) / jnp.sqrt(var + eps) * gamma[None, :] + beta[None, :]
    return y


# ----------------------------------------------------------------------------
# UniformerS1 analogue (patch-embed front ends of the two Swin backbones)
# ----------------------------------------------------------------------------
_MIN_ROWS_FOR_PALLAS = 1024  # below this, XLA dot+LN beats pallas_call overhead


class UniformerS1Pallas:
    def __init__(self, key,
                 img2d=(32, 32), patch2d=(4, 4), in2d=3,
                 img3d=(16, 16, 16), patch3d=(8, 8, 8), in3d=1,
                 embed_dim=96, use_pallas="auto"):
        self.patch2d, self.patch3d = patch2d, patch3d
        self.img2d, self.img3d = img2d, img3d
        self.embed_dim = embed_dim
        self.use_pallas = use_pallas
        k = jax.random.split(key, 4)

        # 2-D branch: timm Swin patch_embed = Conv2d(3, 96, k=4, s=4) + LayerNorm(96)
        k2 = in2d * patch2d[0] * patch2d[1]
        conv2d_w = 0.02 * jax.random.normal(k[0], (embed_dim, in2d, *patch2d), jnp.float32)
        self.w2d_f32 = conv2d_w.reshape(embed_dim, k2).T          # (K, N) f32 (reference)
        self.w2d = self.w2d_f32.astype(jnp.bfloat16)              # (K, N) bf16 (kernel)
        self.b2d = jnp.zeros((embed_dim,), jnp.float32)
        self.g2d = jnp.ones((embed_dim,), jnp.float32)
        self.beta2d = jnp.zeros((embed_dim,), jnp.float32)

        # 3-D branch: PatchEmbed3D = Conv3d(1, 96, k=(8,8,8), s=(8,8,8)) + Identity
        k3 = in3d * patch3d[0] * patch3d[1] * patch3d[2]
        conv3d_w = 0.02 * jax.random.normal(k[1], (embed_dim, in3d, *patch3d), jnp.float32)
        self.w3d_f32 = conv3d_w.reshape(embed_dim, k3).T           # (K, N) f32
        self.w3d = self.w3d_f32.astype(jnp.bfloat16)               # (K, N) bf16
        self.b3d = 0.01 * jax.random.normal(k[2], (embed_dim,), jnp.float32)

    def _run_pallas(self, M):
        if self.use_pallas == "auto":
            return M >= _MIN_ROWS_FOR_PALLAS
        return bool(self.use_pallas)

    def __call__(self, x):
        if x.ndim == 4:
            # 2-D Swin path (twoDemd): patch-embed conv + LayerNorm (fused)
            B, C, H, W = x.shape
            assert (H, W) == self.img2d
            # bf16 BEFORE im2col: the transpose copy + kernel read move bf16.
            patches, (B_, n) = _im2col_2d(x.astype(jnp.bfloat16), self.patch2d)
            if self._run_pallas(patches.shape[0]):
                out = patch_project(patches, self.w2d, self.b2d, self.g2d, self.beta2d)
            else:
                out = _ref_project(patches.astype(jnp.float32), self.w2d_f32,
                                   self.b2d, self.g2d, self.beta2d).astype(jnp.bfloat16)
            # TODO(synk): Swin-Tiny transformer stages of twoDemd omitted (pretrained backbone).
            return out.reshape(B_, n, self.embed_dim)
        else:
            # 3-D path (threeDemd with PatchEmbed3D, norm = Identity) — bias-only kernel
            B, C, H, W, D = x.shape
            assert (H, W, D) == self.img3d, "Input image size doesn't match model."
            patches, (B_, n) = _im2col_3d(x.astype(jnp.bfloat16), self.patch3d)
            if self._run_pallas(patches.shape[0]):
                out = patch_project(patches, self.w3d, self.b3d)
            else:
                out = _ref_project(patches.astype(jnp.float32), self.w3d_f32,
                                   self.b3d).astype(jnp.bfloat16)
            # TODO(synk): Swin-Tiny transformer stages of threeDemd omitted (pretrained backbone).
            return out.reshape(B_, n, self.embed_dim)


if __name__ == "__main__":
    key = jax.random.PRNGKey(0)
    kp, kx3, kx2 = jax.random.split(key, 3)

    # Force the Pallas path so the kernels are exercised even at demo sizes
    # (production default use_pallas="auto" routes tiny M to plain XLA).
    model = UniformerS1Pallas(kp, use_pallas=True)

    # 5-D input → threeDemd (PatchEmbed3D) branch: M = 2*2*2*2 = 16, K = 512
    x3d = jax.random.normal(kx3, (2, 1, 16, 16, 16), jnp.float32)
    y3d = model(x3d)
    jax.block_until_ready(y3d)

    # 4-D input → twoDemd (2-D Swin patch-embed) branch: M = 2*8*8 = 128, K = 48
    x2d = jax.random.normal(kx2, (2, 3, 32, 32), jnp.float32)
    y2d = model(x2d)
    jax.block_until_ready(y2d)

    # Verify the Pallas kernels against an f32 pure-JAX reference
    # (bf16 input/output streams -> loosened tolerance; intentional precision choice).
    p3, (B3, n3) = _im2col_3d(x3d, model.patch3d)
    ref3 = _ref_project(p3, model.w3d_f32, model.b3d).reshape(B3, n3, 96)
    p2, (B2, n2) = _im2col_2d(x2d, model.patch2d)
    ref2 = _ref_project(p2, model.w2d_f32, model.b2d,
                        model.g2d, model.beta2d).reshape(B2, n2, 96)

    assert y3d.shape == (2, 8, 96) and y2d.shape == (2, 64, 96)
    assert y3d.dtype == jnp.bfloat16 and y2d.dtype == jnp.bfloat16
    assert jnp.allclose(y3d.astype(jnp.float32), ref3, atol=3e-2, rtol=3e-2)
    assert jnp.allclose(y2d.astype(jnp.float32), ref2, atol=3e-2, rtol=3e-2)

    print("KERNEL_OK")
</pallas_src>

<mosaic_0001>
module attributes {stable_mosaic.version = 11 : i64} {
  func.func @_proj_bias_kernel(%arg0: i32, %arg1: memref<16x512xbf16, #tpu.memory_space<vmem>>, %arg2: memref<512x96xbf16, #tpu.memory_space<vmem>>, %arg3: memref<1x96xf32, #tpu.memory_space<vmem>>, %arg4: memref<16x96xbf16, #tpu.memory_space<vmem>>) attributes {dimension_semantics = [#tpu.dimension_semantics<parallel>], iteration_bounds = array<i64: 1>, scalar_prefetch = 0 : i64, scratch_operands = 0 : i64, tpu.core_type = #tpu.core_type<tc>, window_params = [{transform_indices = @transform_0, window_bounds = array<i64: 16, 512>}, {pipeline_mode = #tpu.pipeline_mode<synchronous>, transform_indices = @transform_1, window_bounds = array<i64: 512, 96>}, {pipeline_mode = #tpu.pipeline_mode<synchronous>, transform_indices = @transform_2, window_bounds = array<i64: 1, 96>}, {transform_indices = @transform_3, window_bounds = array<i64: 16, 96>}]} {
    %c0 = arith.constant 0 : index
    %c0_0 = arith.constant 0 : index
    %0 = vector.load %arg1[%c0, %c0_0] : memref<16x512xbf16, #tpu.memory_space<vmem>>, vector<16x512xbf16>
    %c0_1 = arith.constant 0 : index
    %c0_2 = arith.constant 0 : index
    %1 = vector.load %arg2[%c0_1, %c0_2] : memref<512x96xbf16, #tpu.memory_space<vmem>>, vector<512x96xbf16>
    %cst = arith.constant dense<0.000000e+00> : vector<16x96xf32>
    %2 = tpu.matmul %0, %1, %cst {dimension_numbers = #tpu.dot_dimension_numbers<[1], [0], [0], [1], [0, 0, 1, 1], [], []>} : vector<16x512xbf16>, vector<512x96xbf16>, vector<16x96xf32> -> vector<16x96xf32>
    %c0_3 = arith.constant 0 : index
    %c0_4 = arith.constant 0 : index
    %3 = vector.load %arg3[%c0_3, %c0_4] : memref<1x96xf32, #tpu.memory_space<vmem>>, vector<1x96xf32>
    %4 = vector.broadcast %3 : vector<1x96xf32> to vector<16x96xf32>
    %5 = arith.addf %2, %4 : vector<16x96xf32>
    %6 = arith.truncf %5 : vector<16x96xf32> to vector<16x96xbf16>
    %c0_5 = arith.constant 0 : index
    %c0_6 = arith.constant 0 : index
    %7 = vector.load %arg4[%c0_5, %c0_6] : memref<16x96xbf16, #tpu.memory_space<vmem>>, vector<16x96xbf16>
    tpu.vector_store %arg4[%c0_5, %c0_6], %6 {strides = array<i32>} : memref<16x96xbf16, #tpu.memory_space<vmem>>, vector<16x96xbf16>,
    return
  }
  func.func @transform_0(%arg0: i32) -> (i32, i32) {
    %c0_i32 = arith.constant 0 : i32
    %c0_i32_0 = arith.constant 0 : i32
    return %arg0, %c0_i32 : i32, i32
  }
  func.func @transform_1(%arg0: i32) -> (i32, i32) {
    %c0_i32 = arith.constant 0 : i32
    %c0_i32_0 = arith.constant 0 : i32
    %c0_i32_1 = arith.constant 0 : i32
    return %c0_i32, %c0_i32_0 : i32, i32
  }
  func.func @transform_2(%arg0: i32) -> (i32, i32) {
    %c0_i32 = arith.constant 0 : i32
    %c0_i32_0 = arith.constant 0 : i32
    %c0_i32_1 = arith.constant 0 : i32
    return %c0_i32, %c0_i32_0 : i32, i32
  }
  func.func @transform_3(%arg0: i32) -> (i32, i32) {
    %c0_i32 = arith.constant 0 : i32
    %c0_i32_0 = arith.constant 0 : i32
    return %arg0, %c0_i32 : i32, i32
  }
}

</mosaic_0001>

<bundles_post_ra>
// kernel: tpu_custom_call.1
= control target key start
LH: loop header
LB: loop body
LE: loop exit
PB: predicated region body
PF: predicated region fallthrough
CT: control target
= control target key end

     0   :  { %s708_s0 = inlined_call_operand.vmem [shape: bf16[16,512], index: 0, kind: input, shape index: {}]   ;;  %s709_s1 = inlined_call_operand.vmem [shape: bf16[512,96], index: 1, kind: input, shape index: {}]   ;;  %s710_s2 = inlined_call_operand.vmem [shape: f32[1,96], index: 2, kind: input, shape index: {}]   ;;  %s711_s3 = inlined_call_operand.hbm [shape: bf16[16,96], index: 3, kind: output, shape index: {}]  }
   0x1   :  { %v500_v0 = vld [vmem:[%s709_s1 + $0x40] sm:$0xff]   ;;  %v504_v4 = vld [vmem:[%s709_s1 + $0x48] sm:$0xff]   ;;  %v508_v8 = vld [vmem:[%s709_s1 + $0x50] sm:$0xff]  }
   0x2   :  { %v501_v1 = vld [vmem:[%s709_s1 + $0xc0] sm:$0xff]   ;;  %453 = vmatprep.subr.bf16.mxu0 %v500_v0  ;;  %v505_v5 = vld [vmem:[%s709_s1 + $0xc8] sm:$0xff]   ;;  %v509_v9 = vld [vmem:[%s709_s1 + $0xd0] sm:$0xff]  }
   0x3   :  { %v502_v2 = vld [vmem:[%s709_s1] sm:$0xff]   ;;  %475 = vmatprep.subr.bf16.mxu1 %v501_v1  ;;  %v506_v6 = vld [vmem:[%s709_s1 + $0x8] sm:$0xff]   ;;  %v510_v10 = vld [vmem:[%s709_s1 + $0x10] sm:$0xff]  }
   0x4   :  { %v503_v3 = vld [vmem:[%s709_s1 + $0x80] sm:$0xff]   ;;  %454 = vmatpush3.bf16.msra.mxu0 %v502_v2  ;;  %v507_v7 = vld [vmem:[%s709_s1 + $0x88] sm:$0xff]   ;;  %v511_v11 = vld [vmem:[%s709_s1 + $0x90] sm:$0xff]  }
   0x5   :  { %476 = vmatpush3.bf16.msra.mxu1 %v503_v3  ;;  %455 = vmatprep.subr.bf16.mxu0 %v504_v4  ;;  %v512_v12 = vld [vmem:[%s709_s1 + $0x58] sm:$0xff]   ;;  %v516_v16 = vld [vmem:[%s709_s1 + $0x60] sm:$0xff]   ;;  %v520_v20 = vld [vmem:[%s709_s1 + $0x68] sm:$0xff]  }
   0x6   :  { %477 = vmatprep.subr.bf16.mxu1 %v505_v5  ;;  %v513_v13 = vld [vmem:[%s709_s1 + $0xd8] sm:$0xff]   ;;  %v517_v17 = vld [vmem:[%s709_s1 + $0xe0] sm:$0xff]   ;;  %v521_v21 = vld [vmem:[%s709_s1 + $0xe8] sm:$0xff]  }
   0x7   :  { %v514_v14 = vld [vmem:[%s709_s1 + $0x18] sm:$0xff]   ;;  %v518_v18 = vld [vmem:[%s709_s1 + $0x20] sm:$0xff]   ;;  %v522_v22 = vld [vmem:[%s709_s1 + $0x28] sm:$0xff]  }
   0x8   :  { %456 = vmatpush3.bf16.msra.mxu0 %v506_v6  ;;  %v515_v15 = vld [vmem:[%s709_s1 + $0x98] sm:$0xff]   ;;  %v519_v19 = vld [vmem:[%s709_s1 + $0xa0] sm:$0xff]   ;;  %v523_v23 = vld [vmem:[%s709_s1 + $0xa8] sm:$0xff]  }
   0x9   :  { %478 = vmatpush3.bf16.msra.mxu1 %v507_v7  ;;  %457 = vmatprep.subr.bf16.mxu0 %v508_v8  ;;  %v524_v24 = vld [vmem:[%s709_s1 + $0x70] sm:$0xff]   ;;  %v528_v28 = vld [vmem:[%s709_s1 + $0x78] sm:$0xff]  }
   0xa   :  { %479 = vmatprep.subr.bf16.mxu1 %v509_v9  ;;  %v525_v25 = vld [vmem:[%s709_s1 + $0xf0] sm:$0xff]   ;;  %v529_v29 = vld [vmem:[%s709_s1 + $0xf8] sm:$0xff]  }
   0xb   :  { %v526_v26 = vld [vmem:[%s709_s1 + $0x30] sm:$0xff]   ;;  %v530_v30 = vld [vmem:[%s709_s1 + $0x38] sm:$0xff]  }
   0xc   :  { %458 = vmatpush3.bf16.msra.mxu0 %v510_v10  ;;  %v527_v27 = vld [vmem:[%s709_s1 + $0xb0] sm:$0xff]   ;;  %v531_v31 = vld [vmem:[%s709_s1 + $0xb8] sm:$0xff]  }
   0xd   :  { %480 = vmatpush3.bf16.msra.mxu1 %v511_v11  ;;  %459 = vmatprep.subr.bf16.mxu0 %v512_v12  ;;  %v532_v32 = vld [vmem:[%s708_s0] ss:$16 sps:$4 sm:$0xff]   ;;  %v534_v33 = vld [vmem:[%s708_s0 + $0x4] ss:$16 sps:$4 sm:$0xff]   ;;  %v535_v34 = vld [vmem:[%s708_s0 + $0x8] ss:$16 sps:$4 sm:$0xff]  }
   0xe   :  { %481 = vmatprep.subr.bf16.mxu1 %v513_v13  ;;  %v537_v35 = vld [vmem:[%s708_s0 + $0xc] ss:$16 sps:$4 sm:$0xff]  }
  0x10   :  { %460 = vmatpush3.bf16.msra.mxu0 %v514_v14 }
  0x11   :  { %482 = vmatpush3.bf16.msra.mxu1 %v515_v15  ;;  %461 = vmatprep.subr.bf16.mxu0 %v516_v16 }
  0x12   :  { %483 = vmatprep.subr.bf16.mxu1 %v517_v17 }
  0x14   :  { %462 = vmatpush3.bf16.msra.mxu0 %v518_v18 }
  0x15   :  { %484 = vmatpush3.bf16.msra.mxu1 %v519_v19  ;;  %463 = vmatprep.subr.bf16.mxu0 %v520_v20 }
  0x16   :  { %485 = vmatprep.subr.bf16.mxu1 %v521_v21 }
  0x18   :  { %464 = vmatpush3.bf16.msra.mxu0 %v522_v22 }
  0x19   :  { %486 = vmatpush3.bf16.msra.mxu1 %v523_v23  ;;  %465 = vmatprep.subr.bf16.mxu0 %v524_v24 }
  0x1a   :  { %487 = vmatprep.subr.bf16.mxu1 %v525_v25 }
  0x1c   :  { %466 = vmatpush3.bf16.msra.mxu0 %v526_v26 }
  0x1d   :  { %488 = vmatpush3.bf16.msra.mxu1 %v527_v27  ;;  %467 = vmatprep.subr.bf16.mxu0 %v528_v28 }
  0x1e   :  { %489 = vmatprep.subr.bf16.mxu1 %v529_v29 }
  0x20   :  { %468 = vmatpush3.bf16.msra.mxu0 %v530_v30 }
  0x21   :  { %490 = vmatpush3.bf16.msra.mxu1 %v531_v31 }
  0x22   :  { %8 = vsyncpa [#allocation3], 0  ;;  %335 = vmatprep.mubr.bf16.mxu0 %v534_v33  ;;  %376 = vmatprep.mubr.bf16.mxu1 %v537_v35  ;;  %v412_v38 = vld [vmem:[%s710_s2] ss:$0 sm:$0xff]  ;;  %vm393_vm0 = vcmask 781312   ;;  %s562_s0 = smov [#allocation2]  }
  0x23   :  { %336 = vmatmul.mubr.bf16.vlgmr.msra.gmra.mrb[0].mxu0 %v532_v32  ;;  %s401_s4 = sshll.u32 %s562_s0, 4  ;;  %s402_s4 = int_to_ptr.vmem [resolvable:$true] %s401_s4 }
  0x24   :  { %377 = vmatmul.mubr.bf16.vlgmr.msra.gmra.mrb[0].mxu1 %v535_v34  ;;  %s538_s2 = scalar_lea.vmem %s402_s4, 128  ;;  %p543_p1 = scmp.lt.s32.totalorder %s402_s4, %s402_s4 }
  0x25   :  { %p539_p0 = scmp.ne.s32.totalorder %s402_s4, %s538_s2  ;;  %p544_p2 = scmp.lt.s32.totalorder %s538_s2, %s538_s2 }
  0x27   :  { %p545_p3 = por %p544_p2, %p543_p1 }
  0x29   :  { %p546_p4 = pnand %p545_p3, %p539_p0 }
  0xf6   :  { %v469_v36 = vpop.f32.mrb[0].mxu0 }
  0xf7   :  { %v491_v37 = vpop.f32.mrb[0].mxu1  ;;  %v470_v39 = vpop.f32.mrb[1].mxu0 }
  0xf8   :  { %v471_v40 = vadd.f32 %v470_v39, %v469_v36  ;;  %v492_v41 = vpop.f32.mrb[1].mxu1  ;;  %v472_v42 = vpop.f32.mrb[2].mxu0 }
  0xf9   :  { %v493_v43 = vadd.f32 %v492_v41, %v491_v37  ;;  %v494_v44 = vpop.f32.mrb[2].mxu1  ;;  %v473_v45 = vpop.f32.mrb[3].mxu0 }
  0xfa   :  { %v338_v46 = vadd.f32 %v471_v40, %v412_v38  ;;  %v474_v47 = vadd.f32 %v473_v45, %v472_v42  ;;  %v495_v48 = vpop.f32.mrb[3].mxu1 }
  0xfb   :  { %v496_v49 = vadd.f32 %v495_v48, %v494_v44 }
  0xfc   :  { %v379_v50 = vadd.f32 %v493_v43, %v338_v46  ;;  %v341_v51 = vadd.f32 %v474_v47, %v412_v38 }
  0xfe   :  { %v451_v52 = vpack.c.bf16 %v379_v50, %v379_v50  ;;  %v382_v53 = vadd.f32 %v496_v49, %v341_v51 }
 0x100   :  { %394 = vst.msk [vmem:[#allocation2] sm:$0xf] %vm393_vm0, %v451_v52  ;;  %v452_v54 = vpack.c.bf16 %v382_v53, %v382_v53 }
 0x102   :  { %395 = vst.msk [vmem:[#allocation2 + $0x4] sm:$0xf] %vm393_vm0, %v452_v54 }
 0x103   :  { %549 = shalt.err (!%p546_p4)
}
 0x104   :  { %s550_s7 = scalar_lea.hbm %s711_s3, 128 }
 0x105   :  { %p551_p5 = scmp.ne.s32.totalorder %s711_s3, %s550_s7  ;;  %p554_p6 = scmp.lt.u32.totalorder %s550_s7, %s711_s3 }
 0x107   :  { %p556_p7 = pnand %p554_p6, %p551_p5 }
 0x109   :  { %559 = shalt.err (!%p556_p7)
}
 0x10a   :  { %s563_s12 = smov 64   ;;  %s564_s13 = smov 4  }
 0x10b   :  { %407 = dma.vmem_to_hbm [thread:$0]  %s402_s4, 128, %s711_s3, [#allocation3], %s563_s12, %s563_s12, %s564_s13  }
 0x10c   :  { %560 = dma.done.wait [#allocation3], 128  }
 0x10d   :  { %561 = vsyncadd [#allocation3], 4294967168 }
 0x10e   :  { %411 = vsyncpa [#allocation3], 1 }

</bundles_post_ra>
